<compile_context>
chip_gen: v6e
topology: v6e:2x2x1
jax: 0.10.0
libtpu: 0.0.40
codegen_flags: <defaults>
</compile_context>

<pallas_src>
from functools import partial

import numpy as np
import jax
import jax.numpy as jnp
from jax.experimental import pallas as pl
from jax.experimental.pallas import tpu as pltpu

_VMEM = pl.BlockSpec(memory_space=pltpu.MemorySpace.VMEM)


# ----------------------------------------------------------------- kernel ---

def _fused_forward_kernel(depth,
                          reld_ref, rele_ref, feat_ref,
                          g1_ref, s1_ref, g2_ref, s2_ref,
                          ak_ref, ha_ref,
                          *out_refs):
    # ---- prologue (loop-invariant): tri_rel = rel_dense @ rel_emb, L2-normalized; tanh(features).
    # F.normalize(p=2, dim=1, eps=1e-12)  ->  x * rsqrt(max(sumsq, eps^2)), eps^2 = 1e-24 (EUP).
    tri = jnp.dot(reld_ref[...], rele_ref[...], preferred_element_type=jnp.float32)   # [E, D]
    sumsq = jnp.sum(tri * tri, axis=1, keepdims=True)                                 # [E, 1]
    trn = tri * jax.lax.rsqrt(jnp.maximum(sumsq, 1e-24))                              # [E, D]
    feats = jnp.tanh(feat_ref[...])                                                   # [N, D]
    out_refs[0][...] = feats

    g1 = g1_ref[...]   # [E,  N] bf16 one-hot gather  (neighbor ids)
    s1 = s1_ref[...]   # [N,  E] bf16 one-hot scatter (center ids)
    g2 = g2_ref[...]   # [E2, N] bf16
    s2 = s2_ref[...]   # [N, E2] bf16

    # ---- relational hops: gather -> Householder reflection -> logits -> softmax -> scatter -> tanh
    for l in range(depth):
        ak = ak_ref[l:l + 1, :]                                                       # [1, D] view
        neighs = jnp.dot(g1, feats.astype(jnp.bfloat16),
                         preferred_element_type=jnp.float32)                          # [E, D] gather
        proj = jnp.sum(neighs * trn, axis=1, keepdims=True)                           # [E, 1]
        refl = neighs - 2.0 * proj * trn                                              # reflection
        att = jnp.sum(trn * ak, axis=1, keepdims=True)                                # [E, 1] logits
        m = jnp.max(att, axis=0, keepdims=True)                                       # global shift
        e = jnp.exp(att - m)                                                          # [E, 1]
        num = jnp.dot(s1, (refl * e).astype(jnp.bfloat16),
                      preferred_element_type=jnp.float32)                             # [N, D]
        den = jnp.dot(s1, e.astype(jnp.bfloat16),
                      preferred_element_type=jnp.float32)                             # [N, 1]
        den = jnp.where(den > 0.0, den, 1.0)                                          # empty rows
        feats = jnp.tanh(num * pl.reciprocal(den, approx=True))
        out_refs[1 + l][...] = feats

    # ---- high-order hops: gather -> logits -> softmax -> scatter -> tanh
    for l in range(depth):
        ha = ha_ref[l:l + 1, :]                                                       # [1, D]
        neighs = jnp.dot(g2, feats.astype(jnp.bfloat16),
                         preferred_element_type=jnp.float32)                          # [E2, D]
        att = jnp.sum(neighs * ha, axis=1, keepdims=True)                             # [E2, 1]
        m = jnp.max(att, axis=0, keepdims=True)
        e = jnp.exp(att - m)
        num = jnp.dot(s2, (neighs * e).astype(jnp.bfloat16),
                      preferred_element_type=jnp.float32)                             # [N, D]
        den = jnp.dot(s2, e.astype(jnp.bfloat16),
                      preferred_element_type=jnp.float32)                             # [N, 1]
        den = jnp.where(den > 0.0, den, 1.0)
        feats = jnp.tanh(num * pl.reciprocal(den, approx=True))
        out_refs[1 + depth + l][...] = feats


def pallas_nr_forward(rel_dense, rel_emb, features,
                      gather1, scatter1, gather2, scatter2,
                      ak_stack, ha_stack, depth):
    n, d = features.shape
    n_out = 2 * depth + 1
    outs = pl.pallas_call(
        partial(_fused_forward_kernel, depth),
        out_shape=tuple(jax.ShapeDtypeStruct((n, d), jnp.float32) for _ in range(n_out)),
        in_specs=[_VMEM] * 9,
        out_specs=tuple(_VMEM for _ in range(n_out)),
    )(rel_dense, rel_emb, features, gather1, scatter1, gather2, scatter2, ak_stack, ha_stack)
    return jnp.concatenate(outs, axis=-1)                           # [N, D * (2*depth + 1)]


# ---------------------------------------------------------------- forward ---

@partial(jax.jit, static_argnames=("node_size", "rel_size", "triple_size"))
def nr_graph_attention_forward(params, features, rel_emb, adj, r_index, r_val, high_nei,
                               node_size, rel_size, triple_size):
    e = adj.shape[1]
    e2 = high_nei.shape[1]
    depth = len(params["attn_kernels"])
    # tri_rel [T, D] is paired row-for-row with the gathered neighbors [E, D] in the torch code.
    assert triple_size == e, f"triple_size ({triple_size}) must equal adj.shape[1] ({e})"

    # glue: densify sparse structures. rel_dense sums duplicates (like coalesce()); the one-hot
    # gather/scatter matrices are exact in bf16 (0/1) and feed the MXU directly.
    rel_dense = jnp.zeros((triple_size, rel_size), jnp.float32).at[r_index[0], r_index[1]].add(r_val)
    gather1 = jnp.zeros((e, node_size), jnp.bfloat16).at[jnp.arange(e), adj[1]].set(1.0)
    scatter1 = jnp.zeros((node_size, e), jnp.bfloat16).at[adj[0], jnp.arange(e)].set(1.0)
    gather2 = jnp.zeros((e2, node_size), jnp.bfloat16).at[jnp.arange(e2), high_nei[1]].set(1.0)
    scatter2 = jnp.zeros((node_size, e2), jnp.bfloat16).at[high_nei[0], jnp.arange(e2)].set(1.0)

    # per-layer [D, 1] attention vectors -> stacked [depth, D] lane-dense rows.
    ak_stack = jnp.concatenate([k.reshape(1, -1) for k in params["attn_kernels"]], axis=0)
    ha_stack = jnp.concatenate([k.reshape(1, -1) for k in params["high_atts"]], axis=0)

    return pallas_nr_forward(rel_dense, rel_emb, features,
                             gather1, scatter1, gather2, scatter2,
                             ak_stack, ha_stack, depth)


# -------------------------------------------------------------------- main ---

if __name__ == "__main__":
    node_size, rel_size, node_dim, depth = 16, 8, 32, 2

    # deterministic, sorted, duplicate-free edge lists
    rng = np.random.RandomState(0)
    edges = set()
    while len(edges) < 32:
        edges.add((int(rng.randint(node_size)), int(rng.randint(node_size))))
    adj_np = np.array(sorted(edges), dtype=np.int32).T              # [2, E]
    e = adj_np.shape[1]
    triple_size = e

    hedges = set()
    while len(hedges) < 32:
        hedges.add((int(rng.randint(node_size)), int(rng.randint(node_size))))
    high_np = np.array(sorted(hedges), dtype=np.int32).T            # [2, E2]

    key = jax.random.PRNGKey(0)
    k1, k2, k3, k4, k5 = jax.random.split(key, 5)
    features = jax.random.normal(k1, (node_size, node_dim), jnp.float32)
    rel_emb = jax.random.normal(k2, (rel_size, node_dim), jnp.float32)
    r_val = jax.random.uniform(k3, (triple_size,), jnp.float32, 0.5, 1.5)
    r_index = jnp.stack([
        jnp.arange(triple_size, dtype=jnp.int32),
        jax.random.randint(k4, (triple_size,), 0, rel_size).astype(jnp.int32),
    ])

    # xavier_uniform for [node_dim, 1] params: bound = sqrt(6 / (fan_in + fan_out)) = sqrt(6/(1+D))
    bound = float(np.sqrt(6.0 / (node_dim + 1)))
    pkeys = jax.random.split(k5, 2 * depth)
    params = {
        "attn_kernels": [jax.random.uniform(pkeys[i], (node_dim, 1), jnp.float32, -bound, bound)
                         for i in range(depth)],
        "high_atts": [jax.random.uniform(pkeys[depth + i], (node_dim, 1), jnp.float32, -bound, bound)
                      for i in range(depth)],
    }

    out = nr_graph_attention_forward(
        params, features, rel_emb, jnp.asarray(adj_np), r_index, r_val, jnp.asarray(high_np),
        node_size=node_size, rel_size=rel_size, triple_size=triple_size)
    out = jax.block_until_ready(out)

    assert out.shape == (node_size, node_dim * (2 * depth + 1)), out.shape
    assert bool(jnp.all(jnp.isfinite(out)))
    print("KERNEL_OK")
</pallas_src>

<mosaic_0001>
module attributes {stable_mosaic.version = 11 : i64} {
  func.func private @main(%arg0: i32) attributes {dimension_semantics = [#tpu.dimension_semantics<core_parallel>], iteration_bounds = array<i64: 2>, tpu.core_type = #tpu.core_type<sc_scalar_subcore>, window_params = []} {
    return
  }
}

module attributes {stable_mosaic.version = 11 : i64} {
  func.func private @main(%arg0: i32) attributes {dimension_semantics = [#tpu.dimension_semantics<core_parallel>], iteration_bounds = array<i64: 2>, tpu.core_type = #tpu.core_type<sc_scalar_subcore>, window_params = []} {
    return
  }
}

module attributes {stable_mosaic.version = 11 : i64} {
  func.func @_fused_forward_kernel(%arg0: memref<32x8xf32, #tpu.memory_space<vmem>>, %arg1: memref<8x32xf32, #tpu.memory_space<vmem>>, %arg2: memref<16x32xf32, #tpu.memory_space<vmem>>, %arg3: memref<32x16xbf16, #tpu.memory_space<vmem>>, %arg4: memref<16x32xbf16, #tpu.memory_space<vmem>>, %arg5: memref<32x16xbf16, #tpu.memory_space<vmem>>, %arg6: memref<16x32xbf16, #tpu.memory_space<vmem>>, %arg7: memref<2x32xf32, #tpu.memory_space<vmem>>, %arg8: memref<2x32xf32, #tpu.memory_space<vmem>>, %arg9: memref<16x32xf32, #tpu.memory_space<vmem>>, %arg10: memref<16x32xf32, #tpu.memory_space<vmem>>, %arg11: memref<16x32xf32, #tpu.memory_space<vmem>>, %arg12: memref<16x32xf32, #tpu.memory_space<vmem>>, %arg13: memref<16x32xf32, #tpu.memory_space<vmem>>) attributes {dimension_semantics = [], scalar_prefetch = 0 : i64, scratch_operands = 0 : i64, tpu.core_type = #tpu.core_type<tc>} {
    %c0 = arith.constant 0 : index
    %c0_0 = arith.constant 0 : index
    %0 = vector.load %arg0[%c0, %c0_0] : memref<32x8xf32, #tpu.memory_space<vmem>>, vector<32x8xf32>
    %c0_1 = arith.constant 0 : index
    %c0_2 = arith.constant 0 : index
    %1 = vector.load %arg1[%c0_1, %c0_2] : memref<8x32xf32, #tpu.memory_space<vmem>>, vector<8x32xf32>
    %cst = arith.constant dense<0.000000e+00> : vector<32x32xf32>
    %2 = tpu.matmul %0, %1, %cst {dimension_numbers = #tpu.dot_dimension_numbers<[1], [0], [0], [1], [0, 0, 1, 1], [], []>} : vector<32x8xf32>, vector<8x32xf32>, vector<32x32xf32> -> vector<32x32xf32>
    %3 = arith.mulf %2, %2 : vector<32x32xf32>
    %cst_3 = arith.constant dense<0.000000e+00> : vector<32xf32>
    %4 = vector.multi_reduction <add>, %3, %cst_3 [1] : vector<32x32xf32> to vector<32xf32>
    %5 = vector.shape_cast %4 : vector<32xf32> to vector<32x1xf32>
    %cst_4 = arith.constant 1.000000e-24 : f32
    %6 = vector.broadcast %cst_4 : f32 to vector<32x1xf32>
    %7 = arith.maximumf %5, %6 : vector<32x1xf32>
    %8 = math.rsqrt %7 : vector<32x1xf32>
    %9 = vector.broadcast %8 : vector<32x1xf32> to vector<32x32xf32>
    %10 = arith.mulf %2, %9 : vector<32x32xf32>
    %c0_5 = arith.constant 0 : index
    %c0_6 = arith.constant 0 : index
    %11 = vector.load %arg2[%c0_5, %c0_6] : memref<16x32xf32, #tpu.memory_space<vmem>>, vector<16x32xf32>
    %12 = math.tanh %11 : vector<16x32xf32>
    %c0_7 = arith.constant 0 : index
    %c0_8 = arith.constant 0 : index
    %13 = vector.load %arg9[%c0_7, %c0_8] : memref<16x32xf32, #tpu.memory_space<vmem>>, vector<16x32xf32>
    tpu.vector_store %arg9[%c0_7, %c0_8], %12 {strides = array<i32>} : memref<16x32xf32, #tpu.memory_space<vmem>>, vector<16x32xf32>,
    %c0_9 = arith.constant 0 : index
    %c0_10 = arith.constant 0 : index
    %14 = vector.load %arg3[%c0_9, %c0_10] : memref<32x16xbf16, #tpu.memory_space<vmem>>, vector<32x16xbf16>
    %c0_11 = arith.constant 0 : index
    %c0_12 = arith.constant 0 : index
    %15 = vector.load %arg4[%c0_11, %c0_12] : memref<16x32xbf16, #tpu.memory_space<vmem>>, vector<16x32xbf16>
    %c0_13 = arith.constant 0 : index
    %c0_14 = arith.constant 0 : index
    %16 = vector.load %arg5[%c0_13, %c0_14] : memref<32x16xbf16, #tpu.memory_space<vmem>>, vector<32x16xbf16>
    %c0_15 = arith.constant 0 : index
    %c0_16 = arith.constant 0 : index
    %17 = vector.load %arg6[%c0_15, %c0_16] : memref<16x32xbf16, #tpu.memory_space<vmem>>, vector<16x32xbf16>
    %c0_17 = arith.constant 0 : index
    %c0_18 = arith.constant 0 : index
    %18 = vector.load %arg7[%c0_17, %c0_18] : memref<2x32xf32, #tpu.memory_space<vmem>>, vector<1x32xf32>
    %19 = arith.truncf %12 : vector<16x32xf32> to vector<16x32xbf16>
    %cst_19 = arith.constant dense<0.000000e+00> : vector<32x32xf32>
    %20 = tpu.matmul %14, %19, %cst_19 {dimension_numbers = #tpu.dot_dimension_numbers<[1], [0], [0], [1], [0, 0, 1, 1], [], []>} : vector<32x16xbf16>, vector<16x32xbf16>, vector<32x32xf32> -> vector<32x32xf32>
    %21 = arith.mulf %20, %10 : vector<32x32xf32>
    %cst_20 = arith.constant dense<0.000000e+00> : vector<32xf32>
    %22 = vector.multi_reduction <add>, %21, %cst_20 [1] : vector<32x32xf32> to vector<32xf32>
    %23 = vector.shape_cast %22 : vector<32xf32> to vector<32x1xf32>
    %cst_21 = arith.constant 2.000000e+00 : f32
    %24 = vector.broadcast %cst_21 : f32 to vector<32x1xf32>
    %25 = arith.mulf %24, %23 : vector<32x1xf32>
    %26 = vector.broadcast %25 : vector<32x1xf32> to vector<32x32xf32>
    %27 = arith.mulf %26, %10 : vector<32x32xf32>
    %28 = arith.subf %20, %27 : vector<32x32xf32>
    %29 = vector.broadcast %18 : vector<1x32xf32> to vector<32x32xf32>
    %30 = arith.mulf %10, %29 : vector<32x32xf32>
    %cst_22 = arith.constant dense<0.000000e+00> : vector<32xf32>
    %31 = vector.multi_reduction <add>, %30, %cst_22 [1] : vector<32x32xf32> to vector<32xf32>
    %32 = vector.shape_cast %31 : vector<32xf32> to vector<32x1xf32>
    %cst_23 = arith.constant dense<0xFF800000> : vector<1xf32>
    %33 = vector.multi_reduction <maximumf>, %32, %cst_23 [0] : vector<32x1xf32> to vector<1xf32>
    %34 = vector.shape_cast %33 : vector<1xf32> to vector<1x1xf32>
    %35 = vector.broadcast %34 : vector<1x1xf32> to vector<32x1xf32>
    %36 = arith.subf %32, %35 : vector<32x1xf32>
    %37 = math.exp %36 : vector<32x1xf32>
    %38 = vector.broadcast %37 : vector<32x1xf32> to vector<32x32xf32>
    %39 = arith.mulf %28, %38 : vector<32x32xf32>
    %40 = arith.truncf %39 : vector<32x32xf32> to vector<32x32xbf16>
    %cst_24 = arith.constant dense<0.000000e+00> : vector<16x32xf32>
    %41 = tpu.matmul %15, %40, %cst_24 {dimension_numbers = #tpu.dot_dimension_numbers<[1], [0], [0], [1], [0, 0, 1, 1], [], []>} : vector<16x32xbf16>, vector<32x32xbf16>, vector<16x32xf32> -> vector<16x32xf32>
    %42 = arith.truncf %37 : vector<32x1xf32> to vector<32x1xbf16>
    %cst_25 = arith.constant dense<0.000000e+00> : vector<16x1xf32>
    %43 = tpu.matmul %15, %42, %cst_25 {dimension_numbers = #tpu.dot_dimension_numbers<[1], [0], [0], [1], [0, 0, 1, 1], [], []>} : vector<16x32xbf16>, vector<32x1xbf16>, vector<16x1xf32> -> vector<16x1xf32>
    %cst_26 = arith.constant 0.000000e+00 : f32
    %44 = vector.broadcast %cst_26 : f32 to vector<16x1xf32>
    %45 = arith.cmpf ogt, %43, %44 : vector<16x1xf32>
    %cst_27 = arith.constant 1.000000e+00 : f32
    %46 = vector.broadcast %cst_27 : f32 to vector<16x1xf32>
    %47 = arith.select %45, %43, %46 : vector<16x1xi1>, vector<16x1xf32>
    %48 = tpu.reciprocal %47 {approx = true} : vector<16x1xf32> -> vector<16x1xf32>
    %49 = vector.broadcast %48 : vector<16x1xf32> to vector<16x32xf32>
    %50 = arith.mulf %41, %49 : vector<16x32xf32>
    %51 = math.tanh %50 : vector<16x32xf32>
    %c0_28 = arith.constant 0 : index
    %c0_29 = arith.constant 0 : index
    %52 = vector.load %arg10[%c0_28, %c0_29] : memref<16x32xf32, #tpu.memory_space<vmem>>, vector<16x32xf32>
    tpu.vector_store %arg10[%c0_28, %c0_29], %51 {strides = array<i32>} : memref<16x32xf32, #tpu.memory_space<vmem>>, vector<16x32xf32>,
    %c1 = arith.constant 1 : index
    %c0_30 = arith.constant 0 : index
    %53 = vector.load %arg7[%c1, %c0_30] : memref<2x32xf32, #tpu.memory_space<vmem>>, vector<1x32xf32>
    %54 = arith.truncf %51 : vector<16x32xf32> to vector<16x32xbf16>
    %cst_31 = arith.constant dense<0.000000e+00> : vector<32x32xf32>
    %55 = tpu.matmul %14, %54, %cst_31 {dimension_numbers = #tpu.dot_dimension_numbers<[1], [0], [0], [1], [0, 0, 1, 1], [], []>} : vector<32x16xbf16>, vector<16x32xbf16>, vector<32x32xf32> -> vector<32x32xf32>
    %56 = arith.mulf %55, %10 : vector<32x32xf32>
    %cst_32 = arith.constant dense<0.000000e+00> : vector<32xf32>
    %57 = vector.multi_reduction <add>, %56, %cst_32 [1] : vector<32x32xf32> to vector<32xf32>
    %58 = vector.shape_cast %57 : vector<32xf32> to vector<32x1xf32>
    %cst_33 = arith.constant 2.000000e+00 : f32
    %59 = vector.broadcast %cst_33 : f32 to vector<32x1xf32>
    %60 = arith.mulf %59, %58 : vector<32x1xf32>
    %61 = vector.broadcast %60 : vector<32x1xf32> to vector<32x32xf32>
    %62 = arith.mulf %61, %10 : vector<32x32xf32>
    %63 = arith.subf %55, %62 : vector<32x32xf32>
    %64 = vector.broadcast %53 : vector<1x32xf32> to vector<32x32xf32>
    %65 = arith.mulf %10, %64 : vector<32x32xf32>
    %cst_34 = arith.constant dense<0.000000e+00> : vector<32xf32>
    %66 = vector.multi_reduction <add>, %65, %cst_34 [1] : vector<32x32xf32> to vector<32xf32>
    %67 = vector.shape_cast %66 : vector<32xf32> to vector<32x1xf32>
    %cst_35 = arith.constant dense<0xFF800000> : vector<1xf32>
    %68 = vector.multi_reduction <maximumf>, %67, %cst_35 [0] : vector<32x1xf32> to vector<1xf32>
    %69 = vector.shape_cast %68 : vector<1xf32> to vector<1x1xf32>
    %70 = vector.broadcast %69 : vector<1x1xf32> to vector<32x1xf32>
    %71 = arith.subf %67, %70 : vector<32x1xf32>
    %72 = math.exp %71 : vector<32x1xf32>
    %73 = vector.broadcast %72 : vector<32x1xf32> to vector<32x32xf32>
    %74 = arith.mulf %63, %73 : vector<32x32xf32>
    %75 = arith.truncf %74 : vector<32x32xf32> to vector<32x32xbf16>
    %cst_36 = arith.constant dense<0.000000e+00> : vector<16x32xf32>
    %76 = tpu.matmul %15, %75, %cst_36 {dimension_numbers = #tpu.dot_dimension_numbers<[1], [0], [0], [1], [0, 0, 1, 1], [], []>} : vector<16x32xbf16>, vector<32x32xbf16>, vector<16x32xf32> -> vector<16x32xf32>
    %77 = arith.truncf %72 : vector<32x1xf32> to vector<32x1xbf16>
    %cst_37 = arith.constant dense<0.000000e+00> : vector<16x1xf32>
    %78 = tpu.matmul %15, %77, %cst_37 {dimension_numbers = #tpu.dot_dimension_numbers<[1], [0], [0], [1], [0, 0, 1, 1], [], []>} : vector<16x32xbf16>, vector<32x1xbf16>, vector<16x1xf32> -> vector<16x1xf32>
    %cst_38 = arith.constant 0.000000e+00 : f32
    %79 = vector.broadcast %cst_38 : f32 to vector<16x1xf32>
    %80 = arith.cmpf ogt, %78, %79 : vector<16x1xf32>
    %cst_39 = arith.constant 1.000000e+00 : f32
    %81 = vector.broadcast %cst_39 : f32 to vector<16x1xf32>
    %82 = arith.select %80, %78, %81 : vector<16x1xi1>, vector<16x1xf32>
    %83 = tpu.reciprocal %82 {approx = true} : vector<16x1xf32> -> vector<16x1xf32>
    %84 = vector.broadcast %83 : vector<16x1xf32> to vector<16x32xf32>
    %85 = arith.mulf %76, %84 : vector<16x32xf32>
    %86 = math.tanh %85 : vector<16x32xf32>
    %c0_40 = arith.constant 0 : index
    %c0_41 = arith.constant 0 : index
    %87 = vector.load %arg11[%c0_40, %c0_41] : memref<16x32xf32, #tpu.memory_space<vmem>>, vector<16x32xf32>
    tpu.vector_store %arg11[%c0_40, %c0_41], %86 {strides = array<i32>} : memref<16x32xf32, #tpu.memory_space<vmem>>, vector<16x32xf32>,
    %c0_42 = arith.constant 0 : index
    %c0_43 = arith.constant 0 : index
    %88 = vector.load %arg8[%c0_42, %c0_43] : memref<2x32xf32, #tpu.memory_space<vmem>>, vector<1x32xf32>
    %89 = arith.truncf %86 : vector<16x32xf32> to vector<16x32xbf16>
    %cst_44 = arith.constant dense<0.000000e+00> : vector<32x32xf32>
    %90 = tpu.matmul %16, %89, %cst_44 {dimension_numbers = #tpu.dot_dimension_numbers<[1], [0], [0], [1], [0, 0, 1, 1], [], []>} : vector<32x16xbf16>, vector<16x32xbf16>, vector<32x32xf32> -> vector<32x32xf32>
    %91 = vector.broadcast %88 : vector<1x32xf32> to vector<32x32xf32>
    %92 = arith.mulf %90, %91 : vector<32x32xf32>
    %cst_45 = arith.constant dense<0.000000e+00> : vector<32xf32>
    %93 = vector.multi_reduction <add>, %92, %cst_45 [1] : vector<32x32xf32> to vector<32xf32>
    %94 = vector.shape_cast %93 : vector<32xf32> to vector<32x1xf32>
    %cst_46 = arith.constant dense<0xFF800000> : vector<1xf32>
    %95 = vector.multi_reduction <maximumf>, %94, %cst_46 [0] : vector<32x1xf32> to vector<1xf32>
    %96 = vector.shape_cast %95 : vector<1xf32> to vector<1x1xf32>
    %97 = vector.broadcast %96 : vector<1x1xf32> to vector<32x1xf32>
    %98 = arith.subf %94, %97 : vector<32x1xf32>
    %99 = math.exp %98 : vector<32x1xf32>
    %100 = vector.broadcast %99 : vector<32x1xf32> to vector<32x32xf32>
    %101 = arith.mulf %90, %100 : vector<32x32xf32>
    %102 = arith.truncf %101 : vector<32x32xf32> to vector<32x32xbf16>
    %cst_47 = arith.constant dense<0.000000e+00> : vector<16x32xf32>
    %103 = tpu.matmul %17, %102, %cst_47 {dimension_numbers = #tpu.dot_dimension_numbers<[1], [0], [0], [1], [0, 0, 1, 1], [], []>} : vector<16x32xbf16>, vector<32x32xbf16>, vector<16x32xf32> -> vector<16x32xf32>
    %104 = arith.truncf %99 : vector<32x1xf32> to vector<32x1xbf16>
    %cst_48 = arith.constant dense<0.000000e+00> : vector<16x1xf32>
    %105 = tpu.matmul %17, %104, %cst_48 {dimension_numbers = #tpu.dot_dimension_numbers<[1], [0], [0], [1], [0, 0, 1, 1], [], []>} : vector<16x32xbf16>, vector<32x1xbf16>, vector<16x1xf32> -> vector<16x1xf32>
    %cst_49 = arith.constant 0.000000e+00 : f32
    %106 = vector.broadcast %cst_49 : f32 to vector<16x1xf32>
    %107 = arith.cmpf ogt, %105, %106 : vector<16x1xf32>
    %cst_50 = arith.constant 1.000000e+00 : f32
    %108 = vector.broadcast %cst_50 : f32 to vector<16x1xf32>
    %109 = arith.select %107, %105, %108 : vector<16x1xi1>, vector<16x1xf32>
    %110 = tpu.reciprocal %109 {approx = true} : vector<16x1xf32> -> vector<16x1xf32>
    %111 = vector.broadcast %110 : vector<16x1xf32> to vector<16x32xf32>
    %112 = arith.mulf %103, %111 : vector<16x32xf32>
    %113 = math.tanh %112 : vector<16x32xf32>
    %c0_51 = arith.constant 0 : index
    %c0_52 = arith.constant 0 : index
    %114 = vector.load %arg12[%c0_51, %c0_52] : memref<16x32xf32, #tpu.memory_space<vmem>>, vector<16x32xf32>
    tpu.vector_store %arg12[%c0_51, %c0_52], %113 {strides = array<i32>} : memref<16x32xf32, #tpu.memory_space<vmem>>, vector<16x32xf32>,
    %c1_53 = arith.constant 1 : index
    %c0_54 = arith.constant 0 : index
    %115 = vector.load %arg8[%c1_53, %c0_54] : memref<2x32xf32, #tpu.memory_space<vmem>>, vector<1x32xf32>
    %116 = arith.truncf %113 : vector<16x32xf32> to vector<16x32xbf16>
    %cst_55 = arith.constant dense<0.000000e+00> : vector<32x32xf32>
    %117 = tpu.matmul %16, %116, %cst_55 {dimension_numbers = #tpu.dot_dimension_numbers<[1], [0], [0], [1], [0, 0, 1, 1], [], []>} : vector<32x16xbf16>, vector<16x32xbf16>, vector<32x32xf32> -> vector<32x32xf32>
    %118 = vector.broadcast %115 : vector<1x32xf32> to vector<32x32xf32>
    %119 = arith.mulf %117, %118 : vector<32x32xf32>
    %cst_56 = arith.constant dense<0.000000e+00> : vector<32xf32>
    %120 = vector.multi_reduction <add>, %119, %cst_56 [1] : vector<32x32xf32> to vector<32xf32>
    %121 = vector.shape_cast %120 : vector<32xf32> to vector<32x1xf32>
    %cst_57 = arith.constant dense<0xFF800000> : vector<1xf32>
    %122 = vector.multi_reduction <maximumf>, %121, %cst_57 [0] : vector<32x1xf32> to vector<1xf32>
    %123 = vector.shape_cast %122 : vector<1xf32> to vector<1x1xf32>
    %124 = vector.broadcast %123 : vector<1x1xf32> to vector<32x1xf32>
    %125 = arith.subf %121, %124 : vector<32x1xf32>
    %126 = math.exp %125 : vector<32x1xf32>
    %127 = vector.broadcast %126 : vector<32x1xf32> to vector<32x32xf32>
    %128 = arith.mulf %117, %127 : vector<32x32xf32>
    %129 = arith.truncf %128 : vector<32x32xf32> to vector<32x32xbf16>
    %cst_58 = arith.constant dense<0.000000e+00> : vector<16x32xf32>
    %130 = tpu.matmul %17, %129, %cst_58 {dimension_numbers = #tpu.dot_dimension_numbers<[1], [0], [0], [1], [0, 0, 1, 1], [], []>} : vector<16x32xbf16>, vector<32x32xbf16>, vector<16x32xf32> -> vector<16x32xf32>
    %131 = arith.truncf %126 : vector<32x1xf32> to vector<32x1xbf16>
    %cst_59 = arith.constant dense<0.000000e+00> : vector<16x1xf32>
    %132 = tpu.matmul %17, %131, %cst_59 {dimension_numbers = #tpu.dot_dimension_numbers<[1], [0], [0], [1], [0, 0, 1, 1], [], []>} : vector<16x32xbf16>, vector<32x1xbf16>, vector<16x1xf32> -> vector<16x1xf32>
    %cst_60 = arith.constant 0.000000e+00 : f32
    %133 = vector.broadcast %cst_60 : f32 to vector<16x1xf32>
    %134 = arith.cmpf ogt, %132, %133 : vector<16x1xf32>
    %cst_61 = arith.constant 1.000000e+00 : f32
    %135 = vector.broadcast %cst_61 : f32 to vector<16x1xf32>
    %136 = arith.select %134, %132, %135 : vector<16x1xi1>, vector<16x1xf32>
    %137 = tpu.reciprocal %136 {approx = true} : vector<16x1xf32> -> vector<16x1xf32>
    %138 = vector.broadcast %137 : vector<16x1xf32> to vector<16x32xf32>
    %139 = arith.mulf %130, %138 : vector<16x32xf32>
    %140 = math.tanh %139 : vector<16x32xf32>
    %c0_62 = arith.constant 0 : index
    %c0_63 = arith.constant 0 : index
    %141 = vector.load %arg13[%c0_62, %c0_63] : memref<16x32xf32, #tpu.memory_space<vmem>>, vector<16x32xf32>
    tpu.vector_store %arg13[%c0_62, %c0_63], %140 {strides = array<i32>} : memref<16x32xf32, #tpu.memory_space<vmem>>, vector<16x32xf32>,
    return
  }
}

</mosaic_0001>

<bundles_post_ra>
// kernel: nr_graph_attention_forward.1
= control target key start
LH: loop header
LB: loop body
LE: loop exit
PB: predicated region body
PF: predicated region fallthrough
CT: control target
= control target key end

     0   :  { %vm43_vm0 = vcmask 64512   ;;  %vm200_vm1 = vcmask 130048   ;;  %vm145_vm2 = vcmask 261120   ;;  %v1383_v61 = vmov 0.0   ;;  %s1703_s1 = inlined_call_operand.vmem [shape: f32[8,32], index: 1, kind: input, shape index: {}]   ;;  %s1704_s0 = inlined_call_operand.vmem [shape: f32[32,8], index: 0, kind: input, shape index: {}]   ;;  %s1705_s2 = inlined_call_operand.vmem [shape: f32[16,32], index: 2, kind: input, shape index: {}]   ;;  %s1706_s3 = inlined_call_operand.vmem [shape: bf16[32,16], index: 3, kind: input, shape index: {}]   ;;  %s1707_s9 = inlined_call_operand.vmem [shape: f32[16,32], index: 9, kind: output, shape index: {0}]   ;;  %s1708_s7 = inlined_call_operand.vmem [shape: f32[2,32], index: 7, kind: input, shape index: {}]   ;;  %s1709_s4 = inlined_call_operand.vmem [shape: bf16[16,32], index: 4, kind: input, shape index: {}]   ;;  %s1710_s10 = inlined_call_operand.vmem [shape: f32[16,32], index: 10, kind: output, shape index: {1}]   ;;  %s1711_s5 = inlined_call_operand.vmem [shape: bf16[32,16], index: 5, kind: input, shape index: {}]   ;;  %s1712_s11 = inlined_call_operand.vmem [shape: f32[16,32], index: 11, kind: output, shape index: {2}]   ;;  %s1713_s8 = inlined_call_operand.vmem [shape: f32[2,32], index: 8, kind: input, shape index: {}]   ;;  %s1714_s6 = inlined_call_operand.vmem [shape: bf16[16,32], index: 6, kind: input, shape index: {}]   ;;  %s1715_s12 = inlined_call_operand.vmem [shape: f32[16,32], index: 12, kind: output, shape index: {3}]   ;;  %s1716_s13 = inlined_call_operand.vmem [shape: f32[16,32], index: 13, kind: output, shape index: {4}]  }
   0x1   :  { %v42_v0 = vld [vmem:[%s1703_s1] sm:$0xff]  ;;  %v39_v2 = vld [vmem:[%s1704_s0 + $0x8] sm:$0xff]  ;;  %v40_v3 = vld [vmem:[%s1704_s0 + $0x10] sm:$0xff]  ;;  %vm1384_vm3 = vmmov 0  }
   0x2   :  { %v38_v1 = vld [vmem:[%s1704_s0] sm:$0xff]  ;;  %1200 = vmatprep.subr.mxu0 %v42_v0  ;;  %v171_v5 = vld [vmem:[%s1705_s2 + $0x8] sm:$0xff]  ;;  %v41_v7 = vld [vmem:[%s1704_s0 + $0x18] sm:$0xff] }
   0x3   :  { %1202 = vmatprep.mubr.msk.f32.mxu0 %vm43_vm0, %v38_v1  ;;  %v170_v4 = vld [vmem:[%s1705_s2] sm:$0xff]  ;;  %1201 = vmatpush3.msra.mxu0 %v42_v0  ;;  %v1499_v11 = vld [vmem:[%s1706_s3 + $0x8] sm:$0xff]  }
   0x4   :  { %1307 = vtanh.f32 %v170_v4  ;;  %1203 = vmatmul.mubr.msk.f32.vlgmr.msra.gmra.mxu0 %vm43_vm0, %v39_v2  ;;  %v1479_v6 = vld [vmem:[%s1706_s3] sm:$0xff]   ;;  %1214 = vmatprep.subr.bf16.mxu0 %v1383_v61 }
   0x5   :  { %1309 = vtanh.f32 %v171_v5  ;;  %1205 = vmatprep.mubr.msk.f32.mxu0 %vm43_vm0, %v40_v3  ;;  %1210 = vmatprep.mubr.msk.bf16.mxu1 %vm200_vm1, %v1479_v6  ;;  %v1137_v33 = vld [vmem:[%s1708_s7] ss:$0 sm:$0xff] }
   0x8   :  { %1206 = vmatmul.mubr.msk.f32.gmra.mxu0 %vm43_vm0, %v41_v7 }
   0x9   :  { %1218 = vmatprep.mubr.msk.bf16.mxu0 %vm1384_vm3, %v1383_v61 }
  0x11   :  { %v1308_v8 = vpop.eup %1307 }
  0x12   :  { %v1310_v9 = vpop.eup %1309  ;;  %174 = vst.msk [vmem:[%s1707_s9] sm:$0xff] %vm145_vm2, %v1308_v8 }
  0x13   :  { %175 = vst.msk [vmem:[%s1707_s9 + $0x8] sm:$0xff] %vm145_vm2, %v1310_v9  ;;  %v189_v10 = vpack.c.bf16 %v1310_v9, %v1308_v8 }
  0x15   :  { %1208 = vmatprep.subr.bf16.mxu1 %v189_v10 }
  0x16   :  { %1209 = vmatpush3.bf16.msra.mxu1 %v189_v10 }
  0x17   :  { %1222 = vmatprep.subr.bf16.mxu1 %v1383_v61 }
  0x19   :  { %1211 = vmatmul.mubr.msk.bf16.vlgmr.msra.gmra.mxu1 %vm200_vm1, %v1499_v11 }
  0x1a   :  { %1226 = vmatprep.mubr.msk.bf16.mxu1 %vm1384_vm3, %v1383_v61 }
  0xc4   :  { %v1204_v12 = vpop.f32.mrf.mxu0 }
  0xc5   :  { %v142_v16 = vmul.f32 %v1204_v12, %v1204_v12 }
  0xc6   :  { %v122_v13 = vpop.f32.mrf.mxu0 }
  0xc7   :  { %v141_v14 = vmul.f32 %v122_v13, %v122_v13  ;;  %v149_v21 = vsel %vm145_vm2, %v142_v16, 0.0 }
  0xc8   :  { %v1207_v15 = vpop.f32.mrf.mxu0 }
  0xc9   :  { %v146_v17 = vsel %vm145_vm2, %v141_v14, 0.0  ;;  %v144_v20 = vmul.f32 %v1207_v15, %v1207_v15 }
  0xca   :  { %147 = vadd.xlane.f32.xlu0 %v146_v17  ;;  %v132_v18 = vpop.f32.mrf.mxu0 }
  0xcb   :  { %v143_v19 = vmul.f32 %v132_v18, %v132_v18  ;;  %v155_v23 = vsel %vm145_vm2, %v144_v20, 0.0 }
  0xcd   :  { %v152_v22 = vsel %vm145_vm2, %v143_v19, 0.0 }
  0xce   :  { %150 = vadd.xlane.f32.xlu0 %v149_v21  ;;  %153 = vadd.xlane.f32.xlu1 %v152_v22 }
  0xd2   :  { %156 = vadd.xlane.f32.xlu1 %v155_v23 }
  0xd9   :  { %v1512_v35 = vpop.f32.mrf.mxu1 }
  0xdb   :  { %v1520_v42 = vpop.f32.mrf.mxu1 }
  0xdd   :  { %v1529_v49 = vpop.f32.mrf.mxu1 }
  0xdf   :  { %v1538_v55 = vpop.f32.mrf.mxu1 }
 0x153   :  { %v148_v24 = vpop.xlane.xlu0 %147 }
 0x154   :  { %v158_v25 = vmax.f32 %v148_v24, 1e-24 }
 0x156   :  { %1311 = vrsqrt.f32 %v158_v25 }
 0x157   :  { %v151_v26 = vpop.xlane.xlu0 %150  ;;  %v154_v27 = vpop.xlane.xlu1 %153 }
 0x158   :  { %v159_v28 = vmax.f32 %v151_v26, 1e-24  ;;  %v160_v29 = vmax.f32 %v154_v27, 1e-24 }
 0x15a   :  { %1313 = vrsqrt.f32 %v159_v28 }
 0x15b   :  { %1315 = vrsqrt.f32 %v160_v29  ;;  %v157_v30 = vpop.xlane.xlu1 %156 }
 0x15c   :  { %v161_v31 = vmax.f32 %v157_v30, 1e-24 }
 0x15e   :  { %1317 = vrsqrt.f32 %v161_v31 }
 0x163   :  { %v1312_v32 = vpop.eup %1311 }
 0x164   :  { %v1510_v34 = vmul.f32 %v1312_v32, %v122_v13 }
 0x166   :  { %v288_v36 = vmul.f32 %v1137_v33, %v1510_v34  ;;  %v256_v54 = vmul.f32 %v1520_v42, %v1510_v34 }
 0x167   :  { %v1314_v37 = vpop.eup %1313 }
 0x168   :  { %v1316_v38 = vpop.eup %1315  ;;  %v1515_v39 = vmul.f32 %v1314_v37, %v1204_v12  ;;  %v292_v40 = vsel %vm145_vm2, %v288_v36, 0.0  ;;  %v260_v59 = vsel %vm145_vm2, %v256_v54, 0.0 }
 0x169   :  { %v1518_v41 = vmul.f32 %v1316_v38, %v132_v18  ;;  %293 = vadd.xlane.f32.xlu0 %v292_v40 }
 0x16a   :  { %v289_v43 = vmul.f32 %v1137_v33, %v1515_v39  ;;  %v257_v57 = vmul.f32 %v1538_v55, %v1515_v39 }
 0x16b   :  { %v1318_v44 = vpop.eup %1317  ;;  %v290_v45 = vmul.f32 %v1137_v33, %v1518_v41  ;;  %v258_v48 = vmul.f32 %v1512_v35, %v1518_v41 }
 0x16c   :  { %v1524_v46 = vmul.f32 %v1318_v44, %v1207_v15  ;;  %v295_v47 = vsel %vm145_vm2, %v289_v43, 0.0  ;;  %v263_v60 = vsel %vm145_vm2, %v257_v57, 0.0 }
 0x16d   :  { %296 = vadd.xlane.f32.xlu1 %v295_v47  ;;  %v298_v50 = vsel %vm145_vm2, %v290_v45, 0.0  ;;  %v266_v56 = vsel %vm145_vm2, %v258_v48, 0.0 }
 0x16e   :  { %299 = vadd.xlane.f32.xlu0 %v298_v50  ;;  %v291_v51 = vmul.f32 %v1137_v33, %v1524_v46  ;;  %v259_v52 = vmul.f32 %v1529_v49, %v1524_v46 }
 0x170   :  { %v301_v53 = vsel %vm145_vm2, %v291_v51, 0.0  ;;  %v269_v58 = vsel %vm145_vm2, %v259_v52, 0.0 }
 0x171   :  { %302 = vadd.xlane.f32.xlu1 %v301_v53 }
 0x172   :  { %267 = vadd.xlane.f32.xlu0 %v266_v56 }
 0x175   :  { %270 = vadd.xlane.f32.xlu1 %v269_v58 }
 0x176   :  { %261 = vadd.xlane.f32.xlu0 %v260_v59 }
 0x179   :  { %264 = vadd.xlane.f32.xlu1 %v263_v60 }
 0x1f2   :  { %v294_v62 = vpop.xlane.xlu0 %293 }
 0x1f6   :  { %v297_v63 = vpop.xlane.xlu1 %296 }
 0x1f7   :  { %v300_v0 = vpop.xlane.xlu0 %299  ;;  %v304_v2 = vmax.f32 %v294_v62, %v297_v63 }
 0x1fa   :  { %v303_v1 = vpop.xlane.xlu1 %302 }
 0x1fb   :  { %v305_v3 = vmax.f32 %v300_v0, %v303_v1  ;;  %v268_v21 = vpop.xlane.xlu0 %267 }
 0x1fc   :  { %v274_v23 = vmul.f32 2.0, %v268_v21 }
 0x1fd   :  { %v306_v4 = vmax.f32 %v304_v2, %v305_v3  ;;  %v1143_v3 = vld [vmem:[%s1708_s7 + $0x1] ss:$0 sm:$0xff] }
 0x1fe   :  { %v271_v22 = vpop.xlane.xlu1 %270  ;;  %v278_v29 = vmul.f32 %v274_v23, %v1518_v41 }
 0x1ff   :  { %v307_v5 = vrot.slane %v306_v4, 4  ;;  %v262_v24 = vpop.xlane.xlu0 %261  ;;  %v275_v26 = vmul.f32 2.0, %v271_v22 }
 0x200   :  { %v272_v27 = vmul.f32 2.0, %v262_v24  ;;  %v282_v37 = vsub.f32 %v1512_v35, %v278_v29  ;;  %v1565_v35 = vld [vmem:[%s1709_s4] sm:$0xff]  }
 0x201   :  { %v308_v7 = vmax.f32 %v306_v4, %v307_v5  ;;  %v279_v30 = vmul.f32 %v275_v26, %v1524_v46  ;;  %v529_v4 = vmul.f32 %v1143_v3, %v1515_v39 }
 0x202   :  { %v265_v25 = vpop.xlane.xlu1 %264  ;;  %v276_v32 = vmul.f32 %v272_v27, %v1510_v34 }
 0x203   :  { %v309_v8 = vrot.slane %v308_v7, 2  ;;  %v273_v28 = vmul.f32 2.0, %v265_v25  ;;  %v283_v40 = vsub.f32 %v1529_v49, %v279_v30  ;;  %v1385_v49 = vmov 0  }
 0x204   :  { %v280_v45 = vsub.f32 %v1520_v42, %v276_v32  ;;  %1299 = vset.pattern.permute.xlu0 %v1385_v49  ;;  %1300 = vset.pattern.permute.xlu1 %v1385_v49  ;;  %v535_v5 = vsel %vm145_vm2, %v529_v4, 0.0 }
 0x205   :  { %v310_v9 = vmax.f32 %v308_v7, %v309_v8  ;;  %v277_v33 = vmul.f32 %v273_v28, %v1515_v39  ;;  %v528_v7 = vmul.f32 %v1143_v3, %v1510_v34 }
 0x207   :  { %v311_v10 = vrot.slane %v310_v9, 1  ;;  %v281_v48 = vsub.f32 %v1538_v55, %v277_v33  ;;  %v532_v8 = vsel %vm145_vm2, %v528_v7, 0.0 }
 0x209   :  { %v312_v12 = vmax.f32 %v310_v9, %v311_v10  ;;  %v530_v9 = vmul.f32 %v1143_v3, %v1518_v41 }
 0x20b   :  { %v313_v13 = vsub.f32 %v294_v62, %v312_v12  ;;  %v314_v14 = vsub.f32 %v297_v63, %v312_v12  ;;  %v315_v15 = vsub.f32 %v300_v0, %v312_v12  ;;  %v316_v16 = vsub.f32 %v303_v1, %v312_v12 }
 0x20c   :  { %v538_v10 = vsel %vm145_vm2, %v530_v9, 0.0  ;;  %v531_v12 = vmul.f32 %v1143_v3, %v1524_v46 }
 0x20d   :  { %v317_v17 = vmul.f32 1.442695, %v313_v13  ;;  %v319_v18 = vmul.f32 1.442695, %v314_v14  ;;  %v321_v19 = vmul.f32 1.442695, %v315_v15 }
 0x20e   :  { %v323_v20 = vmul.f32 1.442695, %v316_v16  ;;  %v541_v13 = vsel %vm145_vm2, %v531_v12, 0.0 }
 0x20f   :  { %1319 = vpow2.f32 %v317_v17 }
 0x210   :  { %1321 = vpow2.f32 %v319_v18 }
 0x211   :  { %1323 = vpow2.f32 %v321_v19 }
 0x212   :  { %1325 = vpow2.f32 %v323_v20 }
 0x21c   :  { %v1320_v31 = vpop.eup %1319 }
 0x21d   :  { %v1322_v36 = vpop.eup %1321  ;;  %v325_v51 = vmul.f32 %v1320_v31, %v280_v45 }
 0x21e   :  { %v1324_v38 = vpop.eup %1323  ;;  %v326_v52 = vmul.f32 %v1322_v36, %v281_v48  ;;  %v380_v54 = vpack.c.bf16 %v1322_v36, %v1320_v31 }
 0x21f   :  { %v1326_v43 = vpop.eup %1325  ;;  %v327_v44 = vmul.f32 %v1324_v38, %v282_v37 }
 0x220   :  { %v328_v47 = vmul.f32 %v1326_v43, %v283_v40  ;;  %v381_v50 = vpack.c.bf16 %v1326_v43, %v1324_v38  ;;  %v329_v42 = vpack.c.bf16 %v326_v52, %v325_v51 }
 0x222   :  { %1223 = vmatpush3.bf16.msra.mxu1 %v381_v50  ;;  %v330_v53 = vpack.c.bf16 %v328_v47, %v327_v44 }
 0x223   :  { %1224 = vmatprep.subr.bf16.mxu1 %v1383_v61 }
 0x224   :  { %1215 = vmatpush3.bf16.msra.mxu0 %v330_v53 }
 0x225   :  { %1216 = vmatprep.subr.bf16.mxu0 %v1383_v61 }
 0x226   :  { %1225 = vmatpush3.bf16.msra.mxu1 %v380_v54 }
 0x227   :  { %1236 = vmatprep.subr.bf16.mxu1 %v1383_v61 }
 0x228   :  { %1217 = vmatpush3.bf16.msra.mxu0 %v329_v42 }
 0x229   :  { %1227 = vmatmul.mubr.msk.bf16.vlgmr.msra.gmra.mxu1 %vm145_vm2, %v1565_v35 }
 0x22a   :  { %1240 = vmatprep.mubr.msk.bf16.mxu1 %vm1384_vm3, %v1383_v61 }
 0x22b   :  { %1219 = vmatmul.mubr.msk.bf16.vlgmr.msra.gmra.mxu0 %vm145_vm2, %v1565_v35 }
 0x22c   :  { %1232 = vmatprep.mubr.msk.bf16.mxu0 %vm200_vm1, %v1479_v6 }
 0x2e9   :  { %v416_v55 = vpop.f32.mrf.mxu1 }
 0x2ea   :  { %vm423_vm4 = vcmp.gt.f32.partialorder %v416_v55, 0.0 }
 0x2eb   :  { %v425_v56 = vsel %vm423_vm4, %v416_v55, 1.0  ;;  %v1228_v57 = vpop.f32.mrf.mxu1  ;;  %v373_v58 = vpop.f32.mrf.mxu0 }
 0x2ec   :  { %1327 = vrcp.f32 %v425_v56 }
 0x2ed   :  { %v419_v59 = vpop.f32.mrf.mxu1  ;;  %v1220_v60 = vpop.f32.mrf.mxu0 }
 0x2ee   :  { %vm424_vm5 = vcmp.gt.f32.partialorder %v419_v59, 0.0 }
 0x2ef   :  { %v426_v62 = vsel %vm424_vm5, %v419_v59, 1.0  ;;  %v1229_v63 = vpop.f32.mrf.mxu1  ;;  %v376_v0 = vpop.f32.mrf.mxu0 }
 0x2f0   :  { %1329 = vrcp.f32 %v426_v62 }
 0x2f1   :  { %v1221_v1 = vpop.f32.mrf.mxu0 }
 0x2f9   :  { %v1328_v2 = vpop.eup %1327 }
 0x2fa   :  { %431 = vperm.xlu0 %1299, %v1328_v2  }
 0x2fd   :  { %v1330_v6 = vpop.eup %1329 }
 0x2fe   :  { %436 = vperm.xlu1 %1300, %v1330_v6  }
 0x319   :  { %536 = vadd.xlane.f32.xlu0 %v535_v5 }
 0x322   :  { %533 = vadd.xlane.f32.xlu1 %v532_v8 }
 0x326   :  { %539 = vadd.xlane.f32.xlu1 %v538_v10 }
 0x32a   :  { %542 = vadd.xlane.f32.xlu1 %v541_v13 }
 0x375   :  { %v432_v14 = vpop.permute.xlu0 %431 }
 0x376   :  { %v439_v15 = vmul.f32 %v432_v14, %v373_v58 }
 0x378   :  { %1331 = vtanh.f32 %v439_v15 }
 0x379   :  { %v437_v16 = vpop.permute.xlu1 %436 }
 0x37a   :  { %v440_v17 = vmul.f32 %v437_v16, %v376_v0 }
 0x37c   :  { %1333 = vtanh.f32 %v440_v17 }
 0x385   :  { %v1332_v18 = vpop.eup %1331 }
 0x386   :  { %443 = vst.msk [vmem:[%s1710_s10] sm:$0xff] %vm145_vm2, %v1332_v18 }
 0x389   :  { %v1334_v19 = vpop.eup %1333 }
 0x38a   :  { %444 = vst.msk [vmem:[%s1710_s10 + $0x8] sm:$0xff] %vm145_vm2, %v1334_v19  ;;  %v446_v20 = vpack.c.bf16 %v1334_v19, %v1332_v18 }
 0x38c   :  { %1230 = vmatprep.subr.bf16.mxu0 %v446_v20 }
 0x38d   :  { %1231 = vmatpush3.bf16.msra.mxu0 %v446_v20 }
 0x38e   :  { %1244 = vmatprep.subr.bf16.mxu0 %v1383_v61 }
 0x390   :  { %1233 = vmatmul.mubr.msk.bf16.vlgmr.msra.gmra.mxu0 %vm200_vm1, %v1499_v11 }
 0x391   :  { %1248 = vmatprep.mubr.msk.bf16.mxu0 %vm1384_vm3, %v1383_v61 }
 0x3a2   :  { %v537_v23 = vpop.xlane.xlu0 %536 }
 0x3ab   :  { %v534_v21 = vpop.xlane.xlu1 %533 }
 0x3ac   :  { %v544_v25 = vmax.f32 %v534_v21, %v537_v23 }
 0x3af   :  { %v540_v22 = vpop.xlane.xlu1 %539 }
 0x3b3   :  { %v543_v24 = vpop.xlane.xlu1 %542 }
 0x3b4   :  { %v545_v26 = vmax.f32 %v540_v22, %v543_v24 }
 0x3b6   :  { %v546_v27 = vmax.f32 %v544_v25, %v545_v26 }
 0x3b8   :  { %v547_v28 = vrot.slane %v546_v27, 4 }
 0x3ba   :  { %v548_v29 = vmax.f32 %v546_v27, %v547_v28 }
 0x3bc   :  { %v549_v30 = vrot.slane %v548_v29, 2 }
 0x3be   :  { %v550_v31 = vmax.f32 %v548_v29, %v549_v30 }
 0x3c0   :  { %v551_v32 = vrot.slane %v550_v31, 1 }
 0x3c2   :  { %v552_v33 = vmax.f32 %v550_v31, %v551_v32 }
 0x3c4   :  { %v553_v36 = vsub.f32 %v534_v21, %v552_v33  ;;  %v555_v37 = vsub.f32 %v540_v22, %v552_v33  ;;  %v556_v38 = vsub.f32 %v543_v24, %v552_v33  ;;  %v554_v11 = vsub.f32 %v537_v23, %v552_v33 }
 0x3c6   :  { %v561_v40 = vmul.f32 1.442695, %v555_v37  ;;  %v563_v43 = vmul.f32 1.442695, %v556_v38  ;;  %v557_v44 = vmul.f32 1.442695, %v553_v36 }
 0x3c7   :  { %v559_v45 = vmul.f32 1.442695, %v554_v11 }
 0x3c8   :  { %1335 = vpow2.f32 %v561_v40 }
 0x3c9   :  { %1337 = vpow2.f32 %v563_v43  ;;  %v1639_v43 = vld [vmem:[%s1711_s5 + $0x8] sm:$0xff]  }
 0x3ca   :  { %1339 = vpow2.f32 %v557_v44 }
 0x3cb   :  { %1341 = vpow2.f32 %v559_v45  ;;  %v1150_v45 = vld [vmem:[%s1713_s8] ss:$0 sm:$0xff] }
 0x3d5   :  { %v1336_v47 = vpop.eup %1335 }
 0x3d6   :  { %v1338_v48 = vpop.eup %1337 }
 0x3d7   :  { %v1340_v50 = vpop.eup %1339  ;;  %v613_v51 = vpack.c.bf16 %v1338_v48, %v1336_v47 }
 0x3d8   :  { %v1342_v52 = vpop.eup %1341 }
 0x3d9   :  { %1245 = vmatpush3.bf16.msra.mxu0 %v613_v51  ;;  %v612_v53 = vpack.c.bf16 %v1342_v52, %v1340_v50 }
 0x3da   :  { %1246 = vmatprep.subr.bf16.mxu0 %v1383_v61 }
 0x3dd   :  { %1247 = vmatpush3.bf16.msra.mxu0 %v612_v53 }
 0x3de   :  { %1258 = vmatprep.subr.bf16.mxu0 %v1383_v61 }
 0x3e0   :  { %1249 = vmatmul.mubr.msk.bf16.vlgmr.msra.gmra.mxu0 %vm145_vm2, %v1565_v35 }
 0x3e1   :  { %1262 = vmatprep.mubr.msk.bf16.mxu0 %vm1384_vm3, %v1383_v61 }
 0x450   :  { %v1234_v54 = vpop.f32.mrf.mxu0 }
 0x451   :  { %v498_v42 = vmul.f32 %v1234_v54, %v1518_v41 }
 0x452   :  { %v481_v49 = vpop.f32.mrf.mxu0 }
 0x453   :  { %v496_v55 = vmul.f32 %v481_v49, %v1510_v34  ;;  %v506_v56 = vsel %vm145_vm2, %v498_v42, 0.0 }
 0x454   :  { %507 = vadd.xlane.f32.xlu1 %v506_v56  ;;  %v1235_v57 = vpop.f32.mrf.mxu0 }
 0x455   :  { %v499_v58 = vmul.f32 %v1235_v57, %v1524_v46  ;;  %v500_v59 = vsel %vm145_vm2, %v496_v55, 0.0 }
 0x456   :  { %v484_v60 = vpop.f32.mrf.mxu0 }
 0x457   :  { %v497_v62 = vmul.f32 %v484_v60, %v1515_v39  ;;  %v509_v63 = vsel %vm145_vm2, %v499_v58, 0.0 }
 0x458   :  { %501 = vadd.xlane.f32.xlu1 %v500_v59 }
 0x459   :  { %v503_v0 = vsel %vm145_vm2, %v497_v62, 0.0 }
 0x45c   :  { %510 = vadd.xlane.f32.xlu1 %v509_v63 }
 0x460   :  { %504 = vadd.xlane.f32.xlu1 %v503_v0 }
 0x4a0   :  { %v648_v1 = vpop.f32.mrf.mxu0 }
 0x4a1   :  { %vm655_vm6 = vcmp.gt.f32.partialorder %v648_v1, 0.0 }
 0x4a2   :  { %v657_v2 = vsel %vm655_vm6, %v648_v1, 1.0  ;;  %v1250_v6 = vpop.f32.mrf.mxu0 }
 0x4a3   :  { %1343 = vrcp.f32 %v657_v2 }
 0x4a4   :  { %v651_v3 = vpop.f32.mrf.mxu0 }
 0x4a5   :  { %vm656_vm7 = vcmp.gt.f32.partialorder %v651_v3, 0.0 }
 0x4a6   :  { %v658_v4 = vsel %vm656_vm7, %v651_v3, 1.0  ;;  %v1251_v5 = vpop.f32.mrf.mxu0 }
 0x4a7   :  { %1345 = vrcp.f32 %v658_v4 }
 0x4b0   :  { %v1344_v7 = vpop.eup %1343 }
 0x4b1   :  { %663 = vperm.xlu0 %1299, %v1344_v7  }
 0x4b4   :  { %v1346_v8 = vpop.eup %1345 }
 0x4b5   :  { %668 = vperm.xlu1 %1300, %v1346_v8  }
 0x4dd   :  { %v508_v9 = vpop.xlane.xlu1 %507 }
 0x4de   :  { %v514_v10 = vmul.f32 2.0, %v508_v9 }
 0x4e0   :  { %v518_v13 = vmul.f32 %v514_v10, %v1518_v41 }
 0x4e1   :  { %v502_v12 = vpop.xlane.xlu1 %501 }
 0x4e2   :  { %v512_v14 = vmul.f32 2.0, %v502_v12  ;;  %v522_v17 = vsub.f32 %v1234_v54, %v518_v13 }
 0x4e4   :  { %v516_v18 = vmul.f32 %v512_v14, %v1510_v34  ;;  %v567_v23 = vmul.f32 %v1336_v47, %v522_v17  ;;  %v1624_v34 = vld [vmem:[%s1711_s5] sm:$0xff]  }
 0x4e5   :  { %v511_v15 = vpop.xlane.xlu1 %510 }
 0x4e6   :  { %v515_v16 = vmul.f32 2.0, %v511_v15  ;;  %v520_v24 = vsub.f32 %v481_v49, %v516_v18 }
 0x4e8   :  { %v519_v19 = vmul.f32 %v515_v16, %v1524_v46  ;;  %v565_v29 = vmul.f32 %v1340_v50, %v520_v24 }
 0x4e9   :  { %v505_v20 = vpop.xlane.xlu1 %504 }
 0x4ea   :  { %v523_v21 = vsub.f32 %v1235_v57, %v519_v19  ;;  %v513_v22 = vmul.f32 2.0, %v505_v20 }
 0x4ec   :  { %v568_v25 = vmul.f32 %v1338_v48, %v523_v21  ;;  %v517_v26 = vmul.f32 %v513_v22, %v1515_v39 }
 0x4ee   :  { %v521_v27 = vsub.f32 %v484_v60, %v517_v26  ;;  %v570_v28 = vpack.c.bf16 %v568_v25, %v567_v23 }
 0x4f0   :  { %v566_v41 = vmul.f32 %v1342_v52, %v521_v27  ;;  %1237 = vmatpush3.bf16.msra.mxu1 %v570_v28  ;;  %v1658_v27 = vld [vmem:[%s1714_s6] sm:$0xff]  }
 0x4f1   :  { %1238 = vmatprep.subr.bf16.mxu1 %v1383_v61 }
 0x4f2   :  { %v569_v30 = vpack.c.bf16 %v566_v41, %v565_v29 }
 0x4f4   :  { %1239 = vmatpush3.bf16.msra.mxu1 %v569_v30 }
 0x4f7   :  { %1241 = vmatmul.mubr.msk.bf16.vlgmr.msra.gmra.mxu1 %vm145_vm2, %v1565_v35 }
 0x4f8   :  { %1254 = vmatprep.mubr.msk.bf16.mxu1 %vm200_vm1, %v1624_v34 }
 0x52c   :  { %v664_v39 = vpop.permute.xlu0 %663 }
 0x530   :  { %v669_v33 = vpop.permute.xlu1 %668 }
 0x5b7   :  { %v605_v46 = vpop.f32.mrf.mxu1 }
 0x5b8   :  { %v671_v31 = vmul.f32 %v664_v39, %v605_v46 }
 0x5b9   :  { %v1242_v32 = vpop.f32.mrf.mxu1 }
 0x5ba   :  { %1347 = vtanh.f32 %v671_v31 }
 0x5bb   :  { %v608_v36 = vpop.f32.mrf.mxu1 }
 0x5bc   :  { %v672_v37 = vmul.f32 %v669_v33, %v608_v36 }
 0x5bd   :  { %v1243_v38 = vpop.f32.mrf.mxu1 }
 0x5be   :  { %1349 = vtanh.f32 %v672_v37 }
 0x5c7   :  { %v1348_v11 = vpop.eup %1347 }
 0x5c8   :  { %675 = vst.msk [vmem:[%s1712_s11] sm:$0xff] %vm145_vm2, %v1348_v11 }
 0x5cb   :  { %v1350_v35 = vpop.eup %1349 }
 0x5cc   :  { %676 = vst.msk [vmem:[%s1712_s11 + $0x8] sm:$0xff] %vm145_vm2, %v1350_v35  ;;  %v678_v40 = vpack.c.bf16 %v1350_v35, %v1348_v11 }
 0x5ce   :  { %1252 = vmatprep.subr.bf16.mxu1 %v678_v40 }
 0x5cf   :  { %1253 = vmatpush3.bf16.msra.mxu1 %v678_v40 }
 0x5d0   :  { %1266 = vmatprep.subr.bf16.mxu1 %v1383_v61 }
 0x5d2   :  { %1255 = vmatmul.mubr.msk.bf16.vlgmr.msra.gmra.mxu1 %vm200_vm1, %v1639_v43 }
 0x5d3   :  { %1270 = vmatprep.mubr.msk.bf16.mxu1 %vm1384_vm3, %v1383_v61 }
 0x692   :  { %v1256_v44 = vpop.f32.mrf.mxu1 }
 0x693   :  { %v750_v42 = vmul.f32 %v1256_v44, %v1150_v45 }
 0x694   :  { %v729_v47 = vpop.f32.mrf.mxu1 }
 0x695   :  { %v748_v48 = vmul.f32 %v1150_v45, %v729_v47  ;;  %v758_v56 = vsel %vm145_vm2, %v750_v42, 0.0 }
 0x696   :  { %v1257_v50 = vpop.f32.mrf.mxu1 }
 0x697   :  { %v751_v51 = vmul.f32 %v1257_v50, %v1150_v45  ;;  %v752_v52 = vsel %vm145_vm2, %v748_v48, 0.0 }
 0x698   :  { %753 = vadd.xlane.f32.xlu1 %v752_v52  ;;  %v732_v53 = vpop.f32.mrf.mxu1 }
 0x699   :  { %v749_v54 = vmul.f32 %v1150_v45, %v732_v53  ;;  %v761_v49 = vsel %vm145_vm2, %v751_v51, 0.0  ;;  %v1156_v51 = vld [vmem:[%s1713_s8 + $0x1] ss:$0 sm:$0xff] }
 0x69b   :  { %v755_v55 = vsel %vm145_vm2, %v749_v54, 0.0 }
 0x69c   :  { %762 = vadd.xlane.f32.xlu1 %v761_v49  ;;  %756 = vadd.xlane.f32.xlu0 %v755_v55 }
 0x6a0   :  { %759 = vadd.xlane.f32.xlu0 %v758_v56 }
 0x721   :  { %v754_v57 = vpop.xlane.xlu1 %753 }
 0x725   :  { %v757_v58 = vpop.xlane.xlu0 %756  ;;  %v763_v59 = vpop.xlane.xlu1 %762 }
 0x726   :  { %v764_v62 = vmax.f32 %v754_v57, %v757_v58 }
 0x729   :  { %v760_v60 = vpop.xlane.xlu0 %759 }
 0x72a   :  { %v765_v63 = vmax.f32 %v760_v60, %v763_v59 }
 0x72c   :  { %v766_v0 = vmax.f32 %v764_v62, %v765_v63 }
 0x72e   :  { %v767_v1 = vrot.slane %v766_v0, 4 }
 0x730   :  { %v768_v2 = vmax.f32 %v766_v0, %v767_v1 }
 0x732   :  { %v769_v6 = vrot.slane %v768_v2, 2 }
 0x734   :  { %v770_v3 = vmax.f32 %v768_v2, %v769_v6 }
 0x736   :  { %v771_v4 = vrot.slane %v770_v3, 1 }
 0x738   :  { %v772_v5 = vmax.f32 %v770_v3, %v771_v4 }
 0x73a   :  { %v773_v7 = vsub.f32 %v754_v57, %v772_v5  ;;  %v774_v8 = vsub.f32 %v757_v58, %v772_v5  ;;  %v775_v9 = vsub.f32 %v760_v60, %v772_v5  ;;  %v776_v10 = vsub.f32 %v763_v59, %v772_v5 }
 0x73c   :  { %v777_v12 = vmul.f32 1.442695, %v773_v7  ;;  %v779_v13 = vmul.f32 1.442695, %v774_v8  ;;  %v781_v14 = vmul.f32 1.442695, %v775_v9 }
 0x73d   :  { %v783_v15 = vmul.f32 1.442695, %v776_v10 }
 0x73e   :  { %1351 = vpow2.f32 %v777_v12 }
 0x73f   :  { %1353 = vpow2.f32 %v779_v13 }
 0x740   :  { %1355 = vpow2.f32 %v781_v14 }
 0x741   :  { %1357 = vpow2.f32 %v783_v15 }
 0x74b   :  { %v1352_v16 = vpop.eup %1351 }
 0x74c   :  { %v1354_v17 = vpop.eup %1353  ;;  %v785_v24 = vmul.f32 %v1352_v16, %v729_v47 }
 0x74d   :  { %v1356_v18 = vpop.eup %1355  ;;  %v786_v25 = vmul.f32 %v1354_v17, %v732_v53  ;;  %v840_v26 = vpack.c.bf16 %v1354_v17, %v1352_v16 }
 0x74e   :  { %v1358_v19 = vpop.eup %1357  ;;  %v787_v20 = vmul.f32 %v1356_v18, %v1256_v44 }
 0x74f   :  { %v841_v21 = vpack.c.bf16 %v1358_v19, %v1356_v18  ;;  %v788_v22 = vmul.f32 %v1358_v19, %v1257_v50  ;;  %v789_v28 = vpack.c.bf16 %v786_v25, %v785_v24 }
 0x751   :  { %1267 = vmatpush3.bf16.msra.mxu1 %v841_v21  ;;  %v790_v23 = vpack.c.bf16 %v788_v22, %v787_v20 }
 0x752   :  { %1268 = vmatprep.subr.bf16.mxu1 %v1383_v61 }
 0x753   :  { %1259 = vmatpush3.bf16.msra.mxu0 %v790_v23 }
 0x754   :  { %1260 = vmatprep.subr.bf16.mxu0 %v1383_v61 }
 0x755   :  { %1269 = vmatpush3.bf16.msra.mxu1 %v840_v26 }
 0x756   :  { %1280 = vmatprep.subr.bf16.mxu1 %v1383_v61 }
 0x757   :  { %1261 = vmatpush3.bf16.msra.mxu0 %v789_v28 }
 0x758   :  { %1271 = vmatmul.mubr.msk.bf16.vlgmr.msra.gmra.mxu1 %vm145_vm2, %v1658_v27 }
 0x759   :  { %1284 = vmatprep.mubr.msk.bf16.mxu1 %vm1384_vm3, %v1383_v61 }
 0x75a   :  { %1263 = vmatmul.mubr.msk.bf16.vlgmr.msra.gmra.mxu0 %vm145_vm2, %v1658_v27 }
 0x75b   :  { %1276 = vmatprep.mubr.msk.bf16.mxu0 %vm200_vm1, %v1624_v34 }
 0x818   :  { %v876_v29 = vpop.f32.mrf.mxu1 }
 0x819   :  { %vm883_vm8 = vcmp.gt.f32.partialorder %v876_v29, 0.0 }
 0x81a   :  { %v885_v41 = vsel %vm883_vm8, %v876_v29, 1.0  ;;  %v1272_v30 = vpop.f32.mrf.mxu1  ;;  %v833_v39 = vpop.f32.mrf.mxu0 }
 0x81b   :  { %1359 = vrcp.f32 %v885_v41 }
 0x81c   :  { %v879_v46 = vpop.f32.mrf.mxu1  ;;  %v1264_v31 = vpop.f32.mrf.mxu0 }
 0x81d   :  { %vm884_vm9 = vcmp.gt.f32.partialorder %v879_v46, 0.0 }
 0x81e   :  { %v886_v32 = vsel %vm884_vm9, %v879_v46, 1.0  ;;  %v1273_v33 = vpop.f32.mrf.mxu1  ;;  %v836_v36 = vpop.f32.mrf.mxu0 }
 0x81f   :  { %1361 = vrcp.f32 %v886_v32 }
 0x820   :  { %v1265_v37 = vpop.f32.mrf.mxu0 }
 0x828   :  { %v1360_v38 = vpop.eup %1359 }
 0x829   :  { %891 = vperm.xlu0 %1299, %v1360_v38  }
 0x82c   :  { %v1362_v11 = vpop.eup %1361 }
 0x82d   :  { %896 = vperm.xlu1 %1300, %v1362_v11  }
 0x8a4   :  { %v892_v35 = vpop.permute.xlu0 %891 }
 0x8a5   :  { %v899_v34 = vmul.f32 %v892_v35, %v833_v39 }
 0x8a7   :  { %1363 = vtanh.f32 %v899_v34 }
 0x8a8   :  { %v897_v40 = vpop.permute.xlu1 %896 }
 0x8a9   :  { %v900_v44 = vmul.f32 %v897_v40, %v836_v36 }
 0x8ab   :  { %1365 = vtanh.f32 %v900_v44 }
 0x8b4   :  { %v1364_v45 = vpop.eup %1363 }
 0x8b5   :  { %903 = vst.msk [vmem:[%s1715_s12] sm:$0xff] %vm145_vm2, %v1364_v45 }
 0x8b8   :  { %v1366_v47 = vpop.eup %1365 }
 0x8b9   :  { %904 = vst.msk [vmem:[%s1715_s12 + $0x8] sm:$0xff] %vm145_vm2, %v1366_v47  ;;  %v906_v48 = vpack.c.bf16 %v1366_v47, %v1364_v45 }
 0x8bb   :  { %1274 = vmatprep.subr.bf16.mxu0 %v906_v48 }
 0x8bc   :  { %1275 = vmatpush3.bf16.msra.mxu0 %v906_v48 }
 0x8bd   :  { %1288 = vmatprep.subr.bf16.mxu0 %v1383_v61 }
 0x8bf   :  { %1277 = vmatmul.mubr.msk.bf16.vlgmr.msra.gmra.mxu0 %vm200_vm1, %v1639_v43 }
 0x8c0   :  { %1292 = vmatprep.mubr.msk.bf16.mxu0 %vm1384_vm3, %v1383_v61 }
 0x97f   :  { %v1278_v50 = vpop.f32.mrf.mxu0 }
 0x980   :  { %v962_v57 = vmul.f32 %v1278_v50, %v1156_v51 }
 0x981   :  { %v941_v52 = vpop.f32.mrf.mxu0 }
 0x982   :  { %v960_v53 = vmul.f32 %v1156_v51, %v941_v52  ;;  %v970_v59 = vsel %vm145_vm2, %v962_v57, 0.0 }
 0x983   :  { %v1279_v54 = vpop.f32.mrf.mxu0 }
 0x984   :  { %v963_v42 = vmul.f32 %v1279_v54, %v1156_v51  ;;  %v964_v49 = vsel %vm145_vm2, %v960_v53, 0.0 }
 0x985   :  { %965 = vadd.xlane.f32.xlu1 %v964_v49  ;;  %v944_v55 = vpop.f32.mrf.mxu0 }
 0x986   :  { %v961_v56 = vmul.f32 %v1156_v51, %v944_v55  ;;  %v973_v43 = vsel %vm145_vm2, %v963_v42, 0.0 }
 0x988   :  { %v967_v58 = vsel %vm145_vm2, %v961_v56, 0.0 }
 0x989   :  { %974 = vadd.xlane.f32.xlu1 %v973_v43  ;;  %968 = vadd.xlane.f32.xlu0 %v967_v58 }
 0x98d   :  { %971 = vadd.xlane.f32.xlu0 %v970_v59 }
 0xa0e   :  { %v966_v60 = vpop.xlane.xlu1 %965 }
 0xa12   :  { %v969_v62 = vpop.xlane.xlu0 %968  ;;  %v975_v63 = vpop.xlane.xlu1 %974 }
 0xa13   :  { %v976_v1 = vmax.f32 %v966_v60, %v969_v62 }
 0xa16   :  { %v972_v0 = vpop.xlane.xlu0 %971 }
 0xa17   :  { %v977_v2 = vmax.f32 %v972_v0, %v975_v63 }
 0xa19   :  { %v978_v6 = vmax.f32 %v976_v1, %v977_v2 }
 0xa1b   :  { %v979_v3 = vrot.slane %v978_v6, 4 }
 0xa1d   :  { %v980_v4 = vmax.f32 %v978_v6, %v979_v3 }
 0xa1f   :  { %v981_v5 = vrot.slane %v980_v4, 2 }
 0xa21   :  { %v982_v7 = vmax.f32 %v980_v4, %v981_v5 }
 0xa23   :  { %v983_v8 = vrot.slane %v982_v7, 1 }
 0xa25   :  { %v984_v9 = vmax.f32 %v982_v7, %v983_v8 }
 0xa27   :  { %v985_v10 = vsub.f32 %v966_v60, %v984_v9  ;;  %v986_v12 = vsub.f32 %v969_v62, %v984_v9  ;;  %v987_v13 = vsub.f32 %v972_v0, %v984_v9  ;;  %v988_v14 = vsub.f32 %v975_v63, %v984_v9 }
 0xa29   :  { %v989_v15 = vmul.f32 1.442695, %v985_v10  ;;  %v991_v16 = vmul.f32 1.442695, %v986_v12  ;;  %v993_v17 = vmul.f32 1.442695, %v987_v13 }
 0xa2a   :  { %v995_v18 = vmul.f32 1.442695, %v988_v14 }
 0xa2b   :  { %1367 = vpow2.f32 %v989_v15 }
 0xa2c   :  { %1369 = vpow2.f32 %v991_v16 }
 0xa2d   :  { %1371 = vpow2.f32 %v993_v17 }
 0xa2e   :  { %1373 = vpow2.f32 %v995_v18 }
 0xa38   :  { %v1368_v19 = vpop.eup %1367 }
 0xa39   :  { %v1370_v20 = vpop.eup %1369  ;;  %v997_v28 = vmul.f32 %v1368_v19, %v941_v52 }
 0xa3a   :  { %v1372_v21 = vpop.eup %1371  ;;  %v998_v29 = vmul.f32 %v1370_v20, %v944_v55  ;;  %v1044_v41 = vpack.c.bf16 %v1370_v20, %v1368_v19 }
 0xa3b   :  { %v1374_v22 = vpop.eup %1373  ;;  %v999_v23 = vmul.f32 %v1372_v21, %v1278_v50 }
 0xa3c   :  { %v1045_v24 = vpack.c.bf16 %v1374_v22, %v1372_v21  ;;  %v1000_v25 = vmul.f32 %v1374_v22, %v1279_v54  ;;  %v1001_v30 = vpack.c.bf16 %v998_v29, %v997_v28 }
 0xa3e   :  { %1289 = vmatpush3.bf16.msra.mxu0 %v1045_v24  ;;  %v1002_v26 = vpack.c.bf16 %v1000_v25, %v999_v23 }
 0xa3f   :  { %1290 = vmatprep.subr.bf16.mxu0 %v1383_v61 }
 0xa40   :  { %1281 = vmatpush3.bf16.msra.mxu1 %v1002_v26 }
 0xa41   :  { %1282 = vmatprep.subr.bf16.mxu1 %v1383_v61 }
 0xa42   :  { %1291 = vmatpush3.bf16.msra.mxu0 %v1044_v41 }
 0xa44   :  { %1283 = vmatpush3.bf16.msra.mxu1 %v1001_v30 }
 0xa45   :  { %1293 = vmatmul.mubr.msk.bf16.vlgmr.msra.gmra.mxu0 %vm145_vm2, %v1658_v27 }
 0xa47   :  { %1285 = vmatmul.mubr.msk.bf16.vlgmr.msra.gmra.mxu1 %vm145_vm2, %v1658_v27 }
 0xb05   :  { %v1080_v39 = vpop.f32.mrf.mxu0 }
 0xb06   :  { %vm1087_vm10 = vcmp.gt.f32.partialorder %v1080_v39, 0.0 }
 0xb07   :  { %v1089_v46 = vsel %vm1087_vm10, %v1080_v39, 1.0  ;;  %v1294_v31 = vpop.f32.mrf.mxu0  ;;  %v1037_v32 = vpop.f32.mrf.mxu1 }
 0xb08   :  { %1375 = vrcp.f32 %v1089_v46 }
 0xb09   :  { %v1083_v33 = vpop.f32.mrf.mxu0  ;;  %v1286_v36 = vpop.f32.mrf.mxu1 }
 0xb0a   :  { %vm1088_vm11 = vcmp.gt.f32.partialorder %v1083_v33, 0.0 }
 0xb0b   :  { %v1090_v37 = vsel %vm1088_vm11, %v1083_v33, 1.0  ;;  %v1295_v61 = vpop.f32.mrf.mxu0  ;;  %v1040_v38 = vpop.f32.mrf.mxu1 }
 0xb0c   :  { %1377 = vrcp.f32 %v1090_v37 }
 0xb0d   :  { %v1287_v11 = vpop.f32.mrf.mxu1 }
 0xb15   :  { %v1376_v35 = vpop.eup %1375 }
 0xb16   :  { %1095 = vperm.xlu0 %1299, %v1376_v35  }
 0xb19   :  { %v1378_v34 = vpop.eup %1377 }
 0xb1a   :  { %1100 = vperm.xlu1 %1300, %v1378_v34  }
 0xb91   :  { %v1096_v40 = vpop.permute.xlu0 %1095 }
 0xb92   :  { %v1103_v27 = vmul.f32 %v1096_v40, %v1037_v32 }
 0xb94   :  { %1379 = vtanh.f32 %v1103_v27 }
 0xb95   :  { %v1101_v44 = vpop.permute.xlu1 %1100 }
 0xb96   :  { %v1104_v45 = vmul.f32 %v1101_v44, %v1040_v38 }
 0xb98   :  { %1381 = vtanh.f32 %v1104_v45 }
 0xba1   :  { %v1380_v47 = vpop.eup %1379 }
 0xba2   :  { %1107 = vst.msk [vmem:[%s1716_s13] sm:$0xff] %vm145_vm2, %v1380_v47 }
 0xba5   :  { %v1382_v48 = vpop.eup %1381 }
 0xba6   :  { %1108 = vst.msk [vmem:[%s1716_s13 + $0x8] sm:$0xff] %vm145_vm2, %v1382_v48 }

</bundles_post_ra>
